<compile_context>
chip_gen: v7x
topology: tpu7x:2x2x1
jax: 0.10.0
libtpu: 0.0.40
codegen_flags: <defaults>
</compile_context>

<pallas_src>
import functools

import jax
import jax.numpy as jnp
from jax.experimental import pallas as pl
from jax.experimental.pallas import tpu as pltpu


def _block_kernel(x_ref, wb_ref, shift_ref, o_ref, *, ho, stride, cout):
    """Fused conv (banded matmuls) + BN(eval) + ReLU + MaxPool2d(2).

    x_ref:     (Nb, Hpad, WCp)   padded NHWC input slab, K padded to WCp (bf16)
    wb_ref:    (kh, WCp, WoC)    banded conv weights, BN scale folded (bf16)
    shift_ref: (1, WoC)          per-lane BN shift (conv bias folded, f32)
    o_ref:     (Nb, Hp, WoC)     pooled output slab, lane-dense f32; valid data
                                 lives in the even Cout-blocks (wrapper slices)
    """
    nb, _, wcp = x_ref.shape
    kh = wb_ref.shape[0]
    _, hp, woc = o_ref.shape

    # Conv as kh accumulated MXU matmuls.  Only one Ho-row slab is live per
    # iteration (ref-side slice) and the i=0 dot initializes the accumulator.
    acc = None
    for i in range(kh):                               # static unroll (kh small)
        if stride == 1:
            rows = x_ref[:, pl.ds(i, ho), :]          # (Nb, Ho, WCp)
        else:
            # TODO(synk): stride>1 path (strided ref window) is unexercised below.
            rows = x_ref[:, pl.ds(i, ho, stride=stride), :]
        lhs = rows.reshape(nb * ho, wcp)              # tile-preserving (WCp % 128 == 0)
        d = jnp.dot(lhs, wb_ref[i], preferred_element_type=jnp.float32)
        acc = d if acc is None else acc + d

    # BatchNorm(eval) shift (scale already folded into wb) + ReLU.
    y = jnp.maximum(acc + shift_ref[...], 0.0)        # (Nb*Ho, WoC) f32

    # MaxPool2d(2), rows: max over adjacent sublane pairs (Ho even, so pairs
    # never cross image boundaries).
    rp = jnp.max(y.reshape(nb * ho // 2, 2, woc), axis=1)     # (Nb*Hp, WoC)

    # MaxPool2d(2), columns: lane roll by one Cout block (XLU, ~free) + max.
    # rolled[:, l] = rp[:, (l + cout) % woc], so even Cout-blocks of `pooled`
    # hold max(col 2q, col 2q+1); odd blocks are wrap-around junk and are
    # sliced off in the wrapper, keeping this store 128-lane dense.
    rolled = pltpu.roll(rp, woc - cout, 1)
    pooled = jnp.maximum(rp, rolled)                  # (Nb*Hp, WoC)

    o_ref[...] = pooled.reshape(nb, hp, woc).astype(o_ref.dtype)


def _vmem_capacity_bytes():
    """Per-core VMEM capacity; conservative (v7x) fallback if the query fails."""
    try:
        cap = getattr(pltpu.get_tpu_info(), "vmem_capacity_bytes", None)
        if cap:
            return int(cap)
    except Exception:
        pass
    return 64 * 1024 * 1024


def _has_two_tensorcores():
    """True on dual-TensorCore chips (v7x); v5e/v6e have one TC per chip."""
    try:
        return "v7" in jax.devices()[0].device_kind.lower()
    except Exception:
        return False


def _pick_images_per_step(n, ho, per_image_bytes, budget_bytes, two_cores):
    """Largest divisor Nb of n whose per-step footprint fits the VMEM budget.

    Single-TC chips (v5e/v6e): one fat step beats many thin ones (nothing to
    parallelize across).  Dual-TC chips (v7x): only split into >=2 'parallel'
    steps when each step still presents an MXU-filling matmul (Nb*Ho >= 256).
    """
    divisors = [d for d in range(1, n + 1) if n % d == 0]
    fitting = [d for d in divisors if d * per_image_bytes <= budget_bytes] or [1]
    nb = max(fitting)
    if two_cores:
        split = [d for d in fitting if n // d >= 2 and d * ho >= 256]
        if split:
            nb = max(split)
    return nb


def block_forward(x, conv_w, conv_b, gamma, beta, run_mean, run_var,
                  *, stride=1, padding=1, eps=1e-5):
    """x: NCHW float32.  Returns NCHW float32 (same as the PyTorch Block)."""
    N, Cin, H, W = x.shape
    Cout, Cin_w, kh, kw = conv_w.shape
    assert Cin == Cin_w and stride >= 1
    Ho = (H + 2 * padding - kh) // stride + 1
    Wo = (W + 2 * padding - kw) // stride + 1
    assert Ho % 2 == 0 and Wo % 2 == 0, "MaxPool2d(2) floor-crop not supported"
    Hp, Wp = Ho // 2, Wo // 2
    Hpad, Wpad = H + 2 * padding, W + 2 * padding
    WC = Wpad * Cin
    WCp = ((WC + 127) // 128) * 128          # K padded to a lane multiple
    WoC = Wo * Cout

    # ---- glue: NCHW -> padded NHWC (bf16), flattened and K-padded to WCp ----
    xh = jnp.transpose(x, (0, 2, 3, 1)).astype(jnp.bfloat16)
    xp = jnp.pad(xh, ((0, 0), (padding, padding), (padding, padding), (0, 0)))
    x_flat = xp.reshape(N, Hpad, WC)
    if WCp != WC:
        x_flat = jnp.pad(x_flat, ((0, 0), (0, 0), (0, WCp - WC)))

    # ---- glue: fold BN(eval) scale/shift into conv; build banded weights ----
    scale = (gamma / jnp.sqrt(run_var + eps)).astype(jnp.float32)          # (Cout,)
    shift = (beta + (conv_b - run_mean) * scale).astype(jnp.float32)       # (Cout,)
    wsc = conv_w.astype(jnp.float32) * scale[:, None, None, None]          # (Cout,Cin,kh,kw)

    # band selector S[j, wout, win] = 1 iff win == wout*stride + j
    wout_idx = jnp.arange(Wo)
    win_idx = jnp.arange(Wpad)
    j_idx = jnp.arange(kw)
    S = (win_idx[None, None, :] ==
         (wout_idx[None, :, None] * stride + j_idx[:, None, None])).astype(jnp.float32)
    # wb[i, win*Cin+c, wout*Cout+o] = wsc[o, c, i, win - wout*stride] (0 outside band)
    wb = jnp.einsum('jpw,ocij->iwcpo', S, wsc).reshape(kh, WC, WoC)
    if WCp != WC:
        wb = jnp.pad(wb, ((0, 0), (0, WCp - WC), (0, 0)))
    wb = wb.astype(jnp.bfloat16)

    shift_row = jnp.tile(shift, Wo).reshape(1, WoC)                        # (1, Wo*Cout)

    # ---- generation-aware batching / VMEM budgeting ----
    vmem_cap = _vmem_capacity_bytes()
    per_image = (2 * Hpad * WCp * 2        # double-buffered bf16 input block
                 + 2 * Hp * WoC * 4        # double-buffered f32 output block
                 + 4 * Ho * WoC * 4)       # f32 intermediates (acc / relu / pool)
    fixed = kh * WCp * WoC * 2 + WoC * 4   # banded weights + shift
    budget = int(0.5 * vmem_cap) - fixed
    Nb = _pick_images_per_step(N, Ho, per_image, budget, _has_two_tensorcores())
    G = N // Nb

    kernel = functools.partial(_block_kernel, ho=Ho, stride=stride, cout=Cout)

    out = pl.pallas_call(
        kernel,
        out_shape=jax.ShapeDtypeStruct((N, Hp, WoC), jnp.float32),
        grid_spec=pltpu.PrefetchScalarGridSpec(
            num_scalar_prefetch=0,
            grid=(G,),
            in_specs=[
                pl.BlockSpec((Nb, Hpad, WCp), lambda g: (g, 0, 0)),   # input images
                pl.BlockSpec((kh, WCp, WoC), lambda g: (0, 0, 0)),    # banded weights
                pl.BlockSpec((1, WoC), lambda g: (0, 0)),             # BN shift
            ],
            out_specs=pl.BlockSpec((Nb, Hp, WoC), lambda g: (g, 0, 0)),
        ),
        compiler_params=pltpu.CompilerParams(
            dimension_semantics=("parallel",),
            vmem_limit_bytes=int(0.75 * vmem_cap),
        ),
    )(x_flat, wb, shift_row)

    # lane-dense kernel output -> keep even Cout-blocks (the pooled columns)
    out_full = out.reshape(N, Hp, Wo, Cout)
    out_nhwc = out_full[:, :, 0::2, :]                                     # (N,Hp,Wp,Cout)
    return jnp.transpose(out_nhwc, (0, 3, 1, 2))                           # NCHW


def _reference(x, conv_w, conv_b, gamma, beta, run_mean, run_var,
               *, stride=1, padding=1, eps=1e-5):
    y = jax.lax.conv_general_dilated(
        x, conv_w, (stride, stride), [(padding, padding), (padding, padding)],
        dimension_numbers=("NCHW", "OIHW", "NCHW"))
    y = y + conv_b[None, :, None, None]
    y = (y - run_mean[None, :, None, None]) / jnp.sqrt(run_var + eps)[None, :, None, None]
    y = y * gamma[None, :, None, None] + beta[None, :, None, None]
    y = jnp.maximum(y, 0.0)
    y = jax.lax.reduce_window(y, -jnp.inf, jax.lax.max,
                              (1, 1, 2, 2), (1, 1, 2, 2), "VALID")
    return y


if __name__ == "__main__":
    # Small shapes consistent with Block(4, 8, kernel_size=3, stride=1, padding=1)
    N, Cin, H, W = 2, 4, 16, 16
    Cout, k, stride, padding = 8, 3, 1, 1

    key = jax.random.PRNGKey(0)
    kx, kw_, kb, kg, kbeta, km, kv = jax.random.split(key, 7)

    x        = jax.random.normal(kx, (N, Cin, H, W), dtype=jnp.float32)
    conv_w   = 0.1 * jax.random.normal(kw_, (Cout, Cin, k, k), dtype=jnp.float32)
    conv_b   = 0.1 * jax.random.normal(kb, (Cout,), dtype=jnp.float32)
    gamma    = 1.0 + 0.1 * jax.random.normal(kg, (Cout,), dtype=jnp.float32)
    beta     = 0.1 * jax.random.normal(kbeta, (Cout,), dtype=jnp.float32)
    run_mean = 0.05 * jax.random.normal(km, (Cout,), dtype=jnp.float32)
    run_var  = 1.0 + 0.1 * jnp.abs(jax.random.normal(kv, (Cout,), dtype=jnp.float32))

    out = block_forward(x, conv_w, conv_b, gamma, beta, run_mean, run_var,
                        stride=stride, padding=padding)
    out = jax.block_until_ready(out)

    ref = _reference(x, conv_w, conv_b, gamma, beta, run_mean, run_var,
                     stride=stride, padding=padding)
    assert out.shape == (N, Cout, H // 2, W // 2), out.shape
    # bf16 conv operands (f32 accumulation) -> tolerance reflects bf16 rounding;
    # structural errors would be O(0.3+) and still fail this check.
    max_err = float(jnp.max(jnp.abs(out - ref)))
    assert jnp.allclose(out, ref, atol=5e-2, rtol=5e-2), max_err

    print("KERNEL_OK")
</pallas_src>

<mosaic_0001>
module attributes {stable_mosaic.version = 11 : i64} {
  func.func @_block_kernel(%arg0: i32, %arg1: memref<2x18x128xbf16, #tpu.memory_space<vmem>>, %arg2: memref<3x128x128xbf16, #tpu.memory_space<vmem>>, %arg3: memref<1x128xf32, #tpu.memory_space<vmem>>, %arg4: memref<2x8x128xf32, #tpu.memory_space<vmem>>) attributes {dimension_semantics = [#tpu.dimension_semantics<parallel>], iteration_bounds = array<i64: 1>, scalar_prefetch = 0 : i64, scratch_operands = 0 : i64, tpu.core_type = #tpu.core_type<tc>, window_params = [{transform_indices = @transform_0, window_bounds = array<i64: 2, 18, 128>}, {pipeline_mode = #tpu.pipeline_mode<synchronous>, transform_indices = @transform_1, window_bounds = array<i64: 3, 128, 128>}, {pipeline_mode = #tpu.pipeline_mode<synchronous>, transform_indices = @transform_2, window_bounds = array<i64: 1, 128>}, {transform_indices = @transform_3, window_bounds = array<i64: 2, 8, 128>}]} {
    %c0 = arith.constant 0 : index
    %c0_0 = arith.constant 0 : index
    %c0_1 = arith.constant 0 : index
    %0 = vector.load %arg1[%c0, %c0_0, %c0_1] : memref<2x18x128xbf16, #tpu.memory_space<vmem>>, vector<2x16x128xbf16>
    %1 = vector.shape_cast %0 : vector<2x16x128xbf16> to vector<32x128xbf16>
    %c0_2 = arith.constant 0 : index
    %c0_3 = arith.constant 0 : index
    %c0_4 = arith.constant 0 : index
    %2 = vector.load %arg2[%c0_2, %c0_3, %c0_4] : memref<3x128x128xbf16, #tpu.memory_space<vmem>>, vector<1x128x128xbf16>
    %3 = vector.shape_cast %2 : vector<1x128x128xbf16> to vector<128x128xbf16>
    %cst = arith.constant dense<0.000000e+00> : vector<32x128xf32>
    %4 = tpu.matmul %1, %3, %cst {dimension_numbers = #tpu.dot_dimension_numbers<[1], [0], [0], [1], [0, 0, 1, 1], [], []>} : vector<32x128xbf16>, vector<128x128xbf16>, vector<32x128xf32> -> vector<32x128xf32>
    %c0_5 = arith.constant 0 : index
    %c1 = arith.constant 1 : index
    %c0_6 = arith.constant 0 : index
    %5 = vector.load %arg1[%c0_5, %c1, %c0_6] : memref<2x18x128xbf16, #tpu.memory_space<vmem>>, vector<2x16x128xbf16>
    %6 = vector.shape_cast %5 : vector<2x16x128xbf16> to vector<32x128xbf16>
    %c1_7 = arith.constant 1 : index
    %c0_8 = arith.constant 0 : index
    %c0_9 = arith.constant 0 : index
    %7 = vector.load %arg2[%c1_7, %c0_8, %c0_9] : memref<3x128x128xbf16, #tpu.memory_space<vmem>>, vector<1x128x128xbf16>
    %8 = vector.shape_cast %7 : vector<1x128x128xbf16> to vector<128x128xbf16>
    %cst_10 = arith.constant dense<0.000000e+00> : vector<32x128xf32>
    %9 = tpu.matmul %6, %8, %cst_10 {dimension_numbers = #tpu.dot_dimension_numbers<[1], [0], [0], [1], [0, 0, 1, 1], [], []>} : vector<32x128xbf16>, vector<128x128xbf16>, vector<32x128xf32> -> vector<32x128xf32>
    %10 = arith.addf %4, %9 : vector<32x128xf32>
    %c0_11 = arith.constant 0 : index
    %c2 = arith.constant 2 : index
    %c0_12 = arith.constant 0 : index
    %11 = vector.load %arg1[%c0_11, %c2, %c0_12] : memref<2x18x128xbf16, #tpu.memory_space<vmem>>, vector<2x16x128xbf16>
    %12 = vector.shape_cast %11 : vector<2x16x128xbf16> to vector<32x128xbf16>
    %c2_13 = arith.constant 2 : index
    %c0_14 = arith.constant 0 : index
    %c0_15 = arith.constant 0 : index
    %13 = vector.load %arg2[%c2_13, %c0_14, %c0_15] : memref<3x128x128xbf16, #tpu.memory_space<vmem>>, vector<1x128x128xbf16>
    %14 = vector.shape_cast %13 : vector<1x128x128xbf16> to vector<128x128xbf16>
    %cst_16 = arith.constant dense<0.000000e+00> : vector<32x128xf32>
    %15 = tpu.matmul %12, %14, %cst_16 {dimension_numbers = #tpu.dot_dimension_numbers<[1], [0], [0], [1], [0, 0, 1, 1], [], []>} : vector<32x128xbf16>, vector<128x128xbf16>, vector<32x128xf32> -> vector<32x128xf32>
    %16 = arith.addf %10, %15 : vector<32x128xf32>
    %c0_17 = arith.constant 0 : index
    %c0_18 = arith.constant 0 : index
    %17 = vector.load %arg3[%c0_17, %c0_18] : memref<1x128xf32, #tpu.memory_space<vmem>>, vector<1x128xf32>
    %18 = vector.broadcast %17 : vector<1x128xf32> to vector<32x128xf32>
    %19 = arith.addf %16, %18 : vector<32x128xf32>
    %cst_19 = arith.constant 0.000000e+00 : f32
    %20 = vector.broadcast %cst_19 : f32 to vector<32x128xf32>
    %21 = arith.maximumf %19, %20 : vector<32x128xf32>
    %22 = vector.shape_cast %21 : vector<32x128xf32> to vector<16x2x128xf32>
    %cst_20 = arith.constant dense<0xFF800000> : vector<16x128xf32>
    %23 = vector.multi_reduction <maximumf>, %22, %cst_20 [1] : vector<16x2x128xf32> to vector<16x128xf32>
    %c120_i32 = arith.constant 120 : i32
    %24 = tpu.dynamic_rotate %23 by %c120_i32 dim 1 : vector<16x128xf32>, i32 -> vector<16x128xf32>
    %25 = arith.maximumf %23, %24 : vector<16x128xf32>
    %26 = vector.shape_cast %25 : vector<16x128xf32> to vector<2x8x128xf32>
    %c0_21 = arith.constant 0 : index
    %c0_22 = arith.constant 0 : index
    %c0_23 = arith.constant 0 : index
    %27 = vector.load %arg4[%c0_21, %c0_22, %c0_23] : memref<2x8x128xf32, #tpu.memory_space<vmem>>, vector<2x8x128xf32>
    tpu.vector_store %arg4[%c0_21, %c0_22, %c0_23], %26 {strides = array<i32>} : memref<2x8x128xf32, #tpu.memory_space<vmem>>, vector<2x8x128xf32>,
    return
  }
  func.func @transform_0(%arg0: i32) -> (i32, i32, i32) {
    %c0_i32 = arith.constant 0 : i32
    %c0_i32_0 = arith.constant 0 : i32
    %c0_i32_1 = arith.constant 0 : i32
    return %arg0, %c0_i32, %c0_i32_0 : i32, i32, i32
  }
  func.func @transform_1(%arg0: i32) -> (i32, i32, i32) {
    %c0_i32 = arith.constant 0 : i32
    %c0_i32_0 = arith.constant 0 : i32
    %c0_i32_1 = arith.constant 0 : i32
    %c0_i32_2 = arith.constant 0 : i32
    return %c0_i32, %c0_i32_0, %c0_i32_1 : i32, i32, i32
  }
  func.func @transform_2(%arg0: i32) -> (i32, i32) {
    %c0_i32 = arith.constant 0 : i32
    %c0_i32_0 = arith.constant 0 : i32
    %c0_i32_1 = arith.constant 0 : i32
    return %c0_i32, %c0_i32_0 : i32, i32
  }
  func.func @transform_3(%arg0: i32) -> (i32, i32, i32) {
    %c0_i32 = arith.constant 0 : i32
    %c0_i32_0 = arith.constant 0 : i32
    %c0_i32_1 = arith.constant 0 : i32
    return %arg0, %c0_i32, %c0_i32_0 : i32, i32, i32
  }
}

</mosaic_0001>

<bundles_post_ra>
// kernel: tpu_custom_call.1
= control target key start
LH: loop header
LB: loop body
LE: loop exit
PB: predicated region body
PF: predicated region fallthrough
CT: control target
= control target key end

     0   :  { %8 = vsyncpa [#allocation3], 0  ;;  %s1291_s0 = inlined_call_operand.vmem [shape: bf16[2,18,128], index: 0, kind: input, shape index: {}]   ;;  %s1292_s1 = inlined_call_operand.hbm [shape: bf16[3,128,128], index: 1, kind: input, shape index: {}]   ;;  %s1293_s2 = inlined_call_operand.vmem [shape: f32[1,128], index: 2, kind: input, shape index: {}]   ;;  %s1294_s3 = inlined_call_operand.hbm [shape: f32[2,8,128], index: 3, kind: output, shape index: {}]  }
   0x1   :  { %9 = vsyncpa [#allocation4], 0  ;;  %s1068_s12 = smov [#allocation2]   ;;  %s1020_s16 = scalar_lea.hbm %s1292_s1, 3072 }
   0x2   :  { %s17_s13 = sshll.u32 %s1068_s12, 4  ;;  %p1021_p0 = scmp.ne.s32.totalorder %s1292_s1, %s1020_s16  ;;  %s18_s13 = int_to_ptr.vmem [resolvable:$true] %s17_s13 }
   0x3   :  { %p1024_p1 = scmp.lt.u32.totalorder %s1020_s16, %s1292_s1 }
   0x5   :  { %p1026_p2 = pnand %p1024_p1, %p1021_p0 }
   0x7   :  { %1029 = shalt.err (!%p1026_p2)
}
   0x8   :  { %s1030_s21 = scalar_lea.vmem %s18_s13, 3072  ;;  %p1035_p4 = scmp.lt.s32.totalorder %s18_s13, %s18_s13 }
   0x9   :  { %p1031_p3 = scmp.ne.s32.totalorder %s18_s13, %s1030_s21  ;;  %p1036_p5 = scmp.lt.s32.totalorder %s1030_s21, %s1030_s21 }
   0xb   :  { %p1037_p6 = por %p1036_p5, %p1035_p4 }
   0xd   :  { %p1038_p7 = pnand %p1037_p6, %p1031_p3 }
   0xf   :  { %1041 = shalt.err (!%p1038_p7)
}
  0x10   :  { %s1069_s22 = smov 64   ;;  %s1070_s23 = smov 4  }
  0x11   :  { %23 = dma.hbm_to_vmem [thread:$0]  %s1292_s1, 3072, %s18_s13, [#allocation3], %s1069_s22, %s1069_s22, %s1070_s23  }
  0x12   :  { %1064 = dma.done.wait [#allocation3], 3072  }
  0x13   :  { %1065 = vsyncadd [#allocation3], 4294964224  ;;  %v994_v0 = vld [vmem:[#allocation2] sm:$0xff]   ;;  %v995_v1 = vld [vmem:[#allocation2 + $0x8] sm:$0xff]   ;;  %vm52_vm0 = vsmask.f32 3328 }
  0x14   :  { %938 = vmatprep.subr.bf16.mxu0 %v994_v0  ;;  %v996_v2 = vld [vmem:[#allocation2 + $0x10] sm:$0xff]   ;;  %v997_v3 = vld [vmem:[#allocation2 + $0x18] sm:$0xff]   ;;  %v1002_v4 = vld [vmem:[#allocation2 + $0x40] sm:$0xff]   ;;  %vm53_vm1 = vsmask.f32 7440  ;;  %vm340_vm2 = vcmask 1042432  }
  0x15   :  { %939 = vmatpush3.bf16.msra.mxu0 %v994_v0  ;;  %v30_v5 = vld [vmem:[%s1291_s0] sm:$0xf]  ;;  %v1114_v6 = vld [vmem:[%s1291_s0 + $0x4] sm:$0xf]  ;;  %918 = vmatprep.subr.bf16.mxu1 %v1002_v4  ;;  %v998_v11 = vld [vmem:[#allocation2 + $0x20] sm:$0xff]   ;;  %vm341_vm3 = vcmask 1046532  }
  0x16   :  { %940 = vmatprep.subr.bf16.mxu0 %v995_v1  ;;  %v56_v7 = vshrl.u32 %v30_v5, 16  ;;  %v59_v8 = vshll.u32 %v30_v5, 16  ;;  %v865_v9 = vcombine.low %v30_v5, %v1114_v6  ;;  %919 = vmatpush3.bf16.msra.mxu1 %v1002_v4  ;;  %v1005_v10 = vld [vmem:[#allocation2 + $0x48] sm:$0xff]   ;;  %v69_v13 = vshrl.u32 %v1114_v6, 16  ;;  %v1008_v15 = vld [vmem:[#allocation2 + $0x50] sm:$0xff]   ;;  %v1010_v20 = vld [vmem:[#allocation2 + $0x58] sm:$0xff]  }
  0x17   :  { %920 = vmatprep.subr.bf16.mxu1 %v1005_v10  ;;  %v1121_v16 = vld [vmem:[%s1291_s0 + $0xc] sm:$0xf]  ;;  %v999_v17 = vld [vmem:[#allocation2 + $0x28] sm:$0xff]   ;;  %v1126_v18 = vld [vmem:[%s1291_s0 + $0x10] sm:$0xf]  ;;  %v65_v21 = vshll.u32 %v1114_v6, 16 }
  0x18   :  { %954 = vmatprep.mubr.bf16.mxu0 %v865_v9  ;;  %v58_v12 = vrot.slane %v56_v7, 4  ;;  %v61_v14 = vrot.slane %v59_v8, 5  ;;  %v80_v19 = vshrl.u32 %v1121_v16, 16  ;;  %v1000_v22 = vld [vmem:[#allocation2 + $0x30] sm:$0xff]   ;;  %v83_v23 = vshll.u32 %v1121_v16, 16  ;;  %v1012_v28 = vld [vmem:[#allocation2 + $0x60] sm:$0xff]   ;;  %vm1139_vm4 = vmor %vm52_vm0, %vm53_vm1 }
  0x19   :  { %941 = vmatpush3.bf16.msra.mxu0 %v995_v1  ;;  %v71_v24 = vrot.slane %v69_v13, 4  ;;  %v93_v25 = vshrl.u32 %v1126_v18, 16  ;;  %v67_v27 = vrot.slane %v65_v21, 5  ;;  %v345_v29 = vrot.slane %v1114_v6, 5  ;;  %v1001_v32 = vld [vmem:[#allocation2 + $0x38] sm:$0xff]   ;;  %v1014_v37 = vld [vmem:[#allocation2 + $0x68] sm:$0xff]   ;;  %vm1153_vm5 = vmor %vm340_vm2, %vm341_vm3 }
  0x1a   :  { %942 = vmatprep.subr.bf16.mxu0 %v996_v2  ;;  %921 = vmatpush3.bf16.msra.mxu1 %v1005_v10  ;;  %v62_v26 = vor.u32 %v61_v14, %v58_v12  ;;  %v89_v31 = vshll.u32 %v1126_v18, 16  ;;  %v82_v33 = vrot.slane %v80_v19, 4  ;;  %v85_v34 = vrot.slane %v83_v23, 5  ;;  %v50_v39 = vld [vmem:[%s1291_s0 + $0x8] sm:$0x1]  ;;  %v1004_v50 = vld [vmem:[#allocation2 + $0x80] sm:$0xff]  }
  0x1b   :  { %922 = vmatprep.subr.bf16.mxu1 %v1008_v15  ;;  %v72_v30 = vor.u32 %v71_v24, %v67_v27  ;;  %v95_v36 = vrot.slane %v93_v25, 4  ;;  %v347_v42 = vrot.slane %v345_v29, 4  ;;  %v75_v43 = vshll.u32 %v50_v39, 16  ;;  %v1146_v46 = vld [vmem:[%s1291_s0 + $0x14] sm:$0x1]  ;;  %v1016_v51 = vld [vmem:[#allocation2 + $0x70] sm:$0xff]  }
  0x1c   :  { %v63_v35 = vrot.slane %v62_v26, 4  ;;  %v91_v38 = vrot.slane %v89_v31, 5  ;;  %v348_v44 = vrot.slane %v50_v39, 5  ;;  %v86_v45 = vor.u32 %v85_v34, %v82_v33  ;;  %v334_v48 = vld [vmem:[%s1291_s0] sm:$0xe]  ;;  %v1018_v1 = vld [vmem:[#allocation2 + $0x78] sm:$0xff]  }
  0x1d   :  { %943 = vmatpush3.bf16.msra.mxu0 %v996_v2  ;;  %v73_v41 = vrot.slane %v72_v30, 4  ;;  %v77_v53 = vrot.slane %v75_v43, 5  ;;  %v99_v54 = vshll.u32 %v1146_v46, 16  ;;  %v875_v55 = vrot.slane %v334_v48, 9  ;;  %v1007_v0 = vld [vmem:[#allocation2 + $0x88] sm:$0xff]   ;;  %v1009_v5 = vld [vmem:[#allocation2 + $0x90] sm:$0xff]  }
  0x1e   :  { %944 = vmatprep.subr.bf16.mxu0 %v997_v3  ;;  %923 = vmatpush3.bf16.msra.mxu1 %v1008_v15  ;;  %v96_v47 = vor.u32 %v95_v36, %v91_v38  ;;  %v68_v52 = vsel %vm1139_vm4, %v63_v35, %v67_v27  ;;  %v866_v56 = vcombine.low %v1121_v16, %v1126_v18  ;;  %v87_v58 = vrot.slane %v86_v45, 4  ;;  %v1011_v7 = vld [vmem:[#allocation2 + $0x98] sm:$0xff]   ;;  %v1013_v8 = vld [vmem:[#allocation2 + $0xa0] sm:$0xff]   ;;  %v1015_v9 = vld [vmem:[#allocation2 + $0xa8] sm:$0xff]   ;;  %s1073_s15 = smov [#allocation5]  }
  0x1f   :  { %924 = vmatprep.subr.bf16.mxu1 %v1010_v20  ;;  %v78_v57 = vsel %vm1139_vm4, %v73_v41, %v77_v53  ;;  %v349_v59 = vsel %vm1153_vm5, %v347_v42, %v348_v44  ;;  %v101_v62 = vrot.slane %v99_v54, 5  ;;  %v346_v63 = vsel %vm1153_vm5, %v875_v55, %v345_v29  ;;  %v335_v12 = vld [vmem:[%s1291_s0 + $0xc] sm:$0xe]  ;;  %v1019_v16 = vld [vmem:[#allocation2 + $0xb8] sm:$0xff]   ;;  %v887_v30 = vld [vmem:[%s1293_s2] ss:$0 sm:$0xff] }
  0x20   :  { %v855_v60 = vcombine.low %v68_v52, %v78_v57  ;;  %v97_v61 = vrot.slane %v96_v47, 4  ;;  %v877_v2 = vcombine.low %v346_v63, %v349_v59  ;;  %v352_v10 = vrot.slane %v1126_v18, 5  ;;  %s1072_s2 = smov 120   ;;  %s843_s16 = sshll.u32 %s1073_s15, 4  ;;  %s844_s16 = int_to_ptr.vmem [resolvable:$true] %s843_s16 }
  0x21   :  { %945 = vmatpush3.bf16.msra.mxu0 %v997_v3  ;;  %v92_v3 = vsel %vm1139_vm4, %v87_v58, %v91_v38  ;;  %v355_v13 = vrot.slane %v1146_v46, 5  ;;  %v876_v14 = vrot.slane %v335_v12, 9  ;;  %v1071_v24 = vmov 1983009808   ;;  %s1042_s17 = scalar_lea.vmem %s844_s16, 256  ;;  %p1047_p9 = scmp.lt.s32.totalorder %s844_s16, %s844_s16 }
  0x22   :  { %946 = vmatprep.subr.bf16.mxu0 %v998_v11  ;;  %925 = vmatpush3.bf16.msra.mxu1 %v1010_v20  ;;  %v102_v4 = vsel %vm1139_vm4, %v97_v61, %v101_v62  ;;  %v354_v15 = vrot.slane %v352_v10, 4  ;;  %v504_v25 = vunpack.c.l.s4 %v1071_v24  ;;  %v506_v26 = vlaneseq  ;;  %p1043_p8 = scmp.ne.s32.totalorder %s844_s16, %s1042_s17  ;;  %p1048_p10 = scmp.lt.s32.totalorder %s1042_s17, %s1042_s17 }
  0x23   :  { %926 = vmatprep.subr.bf16.mxu1 %v1012_v28  ;;  %934 = vmatprep.mubr.bf16.mxu1 %v855_v60  ;;  %v856_v6 = vcombine.low %v92_v3, %v102_v4  ;;  %vm586_vm6 = vcmask 1041408   ;;  %vm715_vm7 = vcmask 1041409   ;;  %vm717_vm8 = vcmask 1042434  }
  0x24   :  { %v356_v18 = vsel %vm1153_vm5, %v354_v15, %v355_v13  ;;  %v505_v27 = vunpack.c.0.s8 %v504_v25  ;;  %vm719_vm9 = vcmask 1043459   ;;  %vm721_vm10 = vcmask 1044484   ;;  %p1049_p11 = por %p1048_p10, %p1047_p9 }
  0x25   :  { %947 = vmatpush3.bf16.msra.mxu0 %v998_v11  ;;  %v1017_v11 = vld [vmem:[#allocation2 + $0xb0] sm:$0xff]   ;;  %vm723_vm11 = vcmask 1045509   ;;  %vm725_vm12 = vcmask 1046534   ;;  %vm727_vm13 = vcmask 1047559  }
  0x26   :  { %948 = vmatprep.subr.bf16.mxu0 %v999_v17  ;;  %927 = vmatpush3.bf16.msra.mxu1 %v1012_v28  ;;  %v507_v28 = vshrl.u32 %v506_v26, 7  ;;  %p1050_p12 = pnand %p1049_p11, %p1043_p8 }
  0x27   :  { %928 = vmatprep.subr.bf16.mxu1 %v1014_v37 }
  0x28   :  { %v1184_v36 = vsub.s32 %v505_v27, %v507_v28 }
  0x29   :  { %949 = vmatpush3.bf16.msra.mxu0 %v999_v17  ;;  %v353_v17 = vsel %vm1153_vm5, %v876_v14, %v352_v10 }
  0x2a   :  { %950 = vmatprep.subr.bf16.mxu0 %v1000_v22  ;;  %929 = vmatpush3.bf16.msra.mxu1 %v1014_v37  ;;  %v878_v19 = vcombine.low %v353_v17, %v356_v18 }
  0x2b   :  { %930 = vmatprep.subr.bf16.mxu1 %v1016_v51 }
  0x2d   :  { %951 = vmatpush3.bf16.msra.mxu0 %v1000_v22 }
  0x2e   :  { %952 = vmatprep.subr.bf16.mxu0 %v1001_v32  ;;  %931 = vmatpush3.bf16.msra.mxu1 %v1016_v51 }
  0x2f   :  { %932 = vmatprep.subr.bf16.mxu1 %v1018_v1 }
  0x31   :  { %953 = vmatpush3.bf16.msra.mxu0 %v1001_v32 }
  0x32   :  { %958 = vmatprep.subr.bf16.mxu0 %v1004_v50  ;;  %933 = vmatpush3.bf16.msra.mxu1 %v1018_v1 }
  0x34   :  { %955 = vmatmul.mubr.bf16.vlgmr.msra.gmra.mrb[0].mxu0 %v866_v56 }
  0x35   :  { %959 = vmatpush3.bf16.msra.mxu0 %v1004_v50  ;;  %974 = vmatprep.mubr.bf16.mxu0 %v877_v2 }
  0x36   :  { %960 = vmatprep.subr.bf16.mxu0 %v1007_v0  ;;  %935 = vmatmul.mubr.bf16.vlgmr.msra.gmra.mrb[0].mxu1 %v856_v6 }
  0x39   :  { %961 = vmatpush3.bf16.msra.mxu0 %v1007_v0 }
  0x3a   :  { %962 = vmatprep.subr.bf16.mxu0 %v1009_v5 }
  0x3d   :  { %963 = vmatpush3.bf16.msra.mxu0 %v1009_v5 }
  0x3e   :  { %964 = vmatprep.subr.bf16.mxu0 %v1011_v7 }
  0x41   :  { %965 = vmatpush3.bf16.msra.mxu0 %v1011_v7 }
  0x42   :  { %966 = vmatprep.subr.bf16.mxu0 %v1013_v8 }
  0x45   :  { %967 = vmatpush3.bf16.msra.mxu0 %v1013_v8 }
  0x46   :  { %968 = vmatprep.subr.bf16.mxu0 %v1015_v9 }
  0x49   :  { %969 = vmatpush3.bf16.msra.mxu0 %v1015_v9 }
  0x4a   :  { %970 = vmatprep.subr.bf16.mxu0 %v1017_v11 }
  0x4d   :  { %971 = vmatpush3.bf16.msra.mxu0 %v1017_v11 }
  0x4e   :  { %972 = vmatprep.subr.bf16.mxu0 %v1019_v16 }
  0x51   :  { %973 = vmatpush3.bf16.msra.mxu0 %v1019_v16 }
  0x54   :  { %975 = vmatmul.mubr.bf16.vlgmr.msra.gmra.mrb[0].mxu0 %v878_v19 }
 0x109   :  { %v936_v20 = vpop.f32.mrb[0].mxu1 }
 0x10a   :  { %v210_v21 = vpop.f32.mrb[1].mxu1 }
 0x10b   :  { %v937_v22 = vpop.f32.mrb[2].mxu1 }
 0x10c   :  { %v213_v23 = vpop.f32.mrb[3].mxu1 }
 0x127   :  { %v976_v29 = vpop.f32.mrb[0].mxu0 }
 0x128   :  { %v978_v31 = vadd.f32 %v976_v29, %v936_v20  ;;  %v464_v32 = vpop.f32.mrb[1].mxu0 }
 0x129   :  { %v979_v33 = vadd.f32 %v464_v32, %v210_v21  ;;  %v977_v34 = vpop.f32.mrb[2].mxu0 }
 0x12a   :  { %v492_v35 = vadd.f32 %v978_v31, %v887_v30  ;;  %v980_v37 = vadd.f32 %v977_v34, %v937_v22  ;;  %v467_v38 = vpop.f32.mrb[3].mxu0 }
 0x12b   :  { %v490_v39 = vadd.f32 %v979_v33, %v887_v30  ;;  %v981_v40 = vadd.f32 %v467_v38, %v213_v23 }
 0x12c   :  { %v496_v41 = vmax.f32 %v492_v35, 0.0  ;;  %v493_v42 = vadd.f32 %v980_v37, %v887_v30 }
 0x12d   :  { %v494_v43 = vmax.f32 %v490_v39, 0.0  ;;  %v491_v49 = vadd.f32 %v981_v40, %v887_v30 }
 0x12e   :  { %v536_v44 = vcombine.high %v496_v41, %v496_v41  ;;  %v543_v45 = vrot.slane %v496_v41, %v1184_v36  ;;  %v1187_v46 = vmax.f32 %v493_v42, 0.0 }
 0x12f   :  { %v502_v47 = vcombine.high %v494_v43, %v494_v43  ;;  %v509_v48 = vrot.slane %v494_v43, %v1184_v36  ;;  %v495_v33 = vmax.f32 %v491_v49, 0.0 }
 0x130   :  { %v550_v50 = vrot.slane %v536_v44, %v1184_v36  ;;  %v551_v51 = vcombine.high %v543_v45, %v543_v45  ;;  %v643_v52 = vsel %vm586_vm6, %v543_v45, -inf  ;;  %v553_v53 = vcombine.high %v1187_v46, %v1187_v46 }
 0x131   :  { %v644_v54 = vrot.slane %v643_v52, 4  ;;  %v516_v55 = vrot.slane %v502_v47, %v1184_v36  ;;  %v517_v56 = vcombine.high %v509_v48, %v509_v48  ;;  %v587_v57 = vsel %vm586_vm6, %v509_v48, -inf }
 0x132   :  { %v552_v58 = vcombine.high %v550_v50, %v550_v50  ;;  %v650_v59 = vsel %vm586_vm6, %v551_v51, -inf  ;;  %v657_v60 = vsel %vm586_vm6, %v550_v50, -inf  ;;  %v588_v61 = vrot.slane %v587_v57, 4 }
 0x133   :  { %v645_v62 = vmax.f32 %v643_v52, %v644_v54  ;;  %v651_v63 = vrot.slane %v650_v59, 4  ;;  %v658_v0 = vrot.slane %v657_v60, 4  ;;  %v518_v1 = vcombine.high %v516_v55, %v516_v55 }
 0x134   :  { %v664_v2 = vsel %vm586_vm6, %v552_v58, -inf  ;;  %v589_v3 = vmax.f32 %v587_v57, %v588_v61  ;;  %v594_v4 = vsel %vm586_vm6, %v517_v56, -inf  ;;  %v601_v5 = vsel %vm586_vm6, %v516_v55, -inf }
 0x135   :  { %v646_v6 = vrot.slane %v645_v62, 2  ;;  %v652_v7 = vmax.f32 %v650_v59, %v651_v63  ;;  %v659_v8 = vmax.f32 %v657_v60, %v658_v0  ;;  %v665_v9 = vrot.slane %v664_v2, 4 }
 0x136   :  { %v590_v10 = vrot.slane %v589_v3, 2  ;;  %v595_v11 = vrot.slane %v594_v4, 4  ;;  %v602_v12 = vrot.slane %v601_v5, 4  ;;  %v608_v13 = vsel %vm586_vm6, %v518_v1, -inf }
 0x137   :  { %v647_v14 = vmax.f32 %v645_v62, %v646_v6  ;;  %v653_v15 = vrot.slane %v652_v7, 2  ;;  %v660_v16 = vrot.slane %v659_v8, 2  ;;  %v666_v17 = vmax.f32 %v664_v2, %v665_v9 }
 0x138   :  { %v591_v18 = vmax.f32 %v589_v3, %v590_v10  ;;  %v596_v19 = vmax.f32 %v594_v4, %v595_v11  ;;  %v603_v20 = vmax.f32 %v601_v5, %v602_v12  ;;  %v609_v21 = vrot.slane %v608_v13, 4 }
 0x139   :  { %v648_v22 = vrot.slane %v647_v14, 1  ;;  %v654_v23 = vmax.f32 %v652_v7, %v653_v15  ;;  %v661_v24 = vmax.f32 %v659_v8, %v660_v16  ;;  %v667_v25 = vrot.slane %v666_v17, 2 }
 0x13a   :  { %v592_v26 = vrot.slane %v591_v18, 1  ;;  %v597_v27 = vrot.slane %v596_v19, 2  ;;  %v604_v28 = vrot.slane %v603_v20, 2  ;;  %v610_v29 = vmax.f32 %v608_v13, %v609_v21 }
 0x13b   :  { %v655_v30 = vrot.slane %v654_v23, 1  ;;  %v662_v31 = vrot.slane %v661_v24, 1  ;;  %v1202_v32 = vmax.f32 %v666_v17, %v667_v25  ;;  %v1204_v34 = vmax.f32 %v647_v14, %v648_v22 }
 0x13c   :  { %v598_v35 = vmax.f32 %v596_v19, %v597_v27  ;;  %v605_v37 = vmax.f32 %v603_v20, %v604_v28  ;;  %v611_v38 = vrot.slane %v610_v29, 2  ;;  %v1210_v41 = vmax.f32 %v591_v18, %v592_v26 }
 0x13d   :  { %v1206_v39 = vmax.f32 %v654_v23, %v655_v30  ;;  %v1208_v40 = vmax.f32 %v661_v24, %v662_v31  ;;  %v560_v42 = vrot.slane %v1187_v46, %v1184_v36  ;;  %v669_v43 = vrot.slane %v1202_v32, 1 }
 0x13e   :  { %v599_v44 = vrot.slane %v598_v35, 1  ;;  %v606_v45 = vrot.slane %v605_v37, 1  ;;  %v567_v47 = vrot.slane %v553_v53, %v1184_v36  ;;  %v519_v50 = vcombine.high %v495_v33, %v495_v33 }
 0x13f   :  { %v568_v48 = vcombine.high %v560_v42, %v560_v42  ;;  %v671_v49 = vsel %vm586_vm6, %v560_v42, -inf  ;;  %v526_v51 = vrot.slane %v495_v33, %v1184_v36  ;;  %v612_v54 = vmax.f32 %v610_v29, %v611_v38 }
 0x140   :  { %v1218_v52 = vmax.f32 %v598_v35, %v599_v44  ;;  %v569_v55 = vcombine.high %v567_v47, %v567_v47  ;;  %v672_v56 = vrot.slane %v671_v49, 4  ;;  %v685_v57 = vsel %vm586_vm6, %v567_v47, -inf }
 0x141   :  { %v678_v46 = vsel %vm586_vm6, %v568_v48, -inf  ;;  %v533_v58 = vrot.slane %v519_v50, %v1184_v36  ;;  %v534_v59 = vcombine.high %v526_v51, %v526_v51  ;;  %v1223_v53 = vmax.f32 %v605_v37, %v606_v45 }
 0x142   :  { %v673_v60 = vmax.f32 %v671_v49, %v672_v56  ;;  %v679_v61 = vrot.slane %v678_v46, 4  ;;  %v686_v62 = vrot.slane %v685_v57, 4  ;;  %v692_v63 = vsel %vm586_vm6, %v569_v55, -inf }
 0x143   :  { %v535_v0 = vcombine.high %v533_v58, %v533_v58  ;;  %v615_v1 = vsel %vm586_vm6, %v526_v51, -inf  ;;  %v622_v2 = vsel %vm586_vm6, %v534_v59, -inf  ;;  %v629_v36 = vsel %vm586_vm6, %v533_v58, -inf }
 0x144   :  { %v674_v3 = vrot.slane %v673_v60, 2  ;;  %v680_v4 = vmax.f32 %v678_v46, %v679_v61  ;;  %v687_v5 = vmax.f32 %v685_v57, %v686_v62  ;;  %v616_v6 = vrot.slane %v615_v1, 4 }
 0x145   :  { %v623_v7 = vrot.slane %v622_v2, 4  ;;  %v613_v8 = vrot.slane %v612_v54, 1  ;;  %v636_v9 = vsel %vm586_vm6, %v535_v0, -inf  ;;  %v693_v12 = vrot.slane %v692_v63, 4 }
 0x146   :  { %v675_v10 = vmax.f32 %v673_v60, %v674_v3  ;;  %v681_v11 = vrot.slane %v680_v4, 2  ;;  %v617_v13 = vmax.f32 %v615_v1, %v616_v6  ;;  %v688_v14 = vrot.slane %v687_v5, 2 }
 0x147   :  { %v624_v15 = vmax.f32 %v622_v2, %v623_v7  ;;  %v630_v16 = vrot.slane %v629_v36, 4  ;;  %v637_v17 = vrot.slane %v636_v9, 4  ;;  %v716_v21 = vsel %vm715_vm7, %v1218_v52, %v1210_v41 }
 0x148   :  { %v676_v18 = vrot.slane %v675_v10, 1  ;;  %v682_v19 = vmax.f32 %v680_v4, %v681_v11  ;;  %v618_v20 = vrot.slane %v617_v13, 2  ;;  %v614_v24 = vmax.f32 %v612_v54, %v613_v8 }
 0x149   :  { %v625_v22 = vrot.slane %v624_v15, 2  ;;  %v631_v23 = vmax.f32 %v629_v36, %v630_v16  ;;  %v638_v25 = vmax.f32 %v636_v9, %v637_v17  ;;  %v718_v28 = vsel %vm717_vm8, %v1223_v53, %v716_v21 }
 0x14a   :  { %v1233_v26 = vmax.f32 %v675_v10, %v676_v18  ;;  %v619_v27 = vmax.f32 %v617_v13, %v618_v20  ;;  %v1238_v29 = vmax.f32 %v1202_v32, %v669_v43  ;;  %v683_v35 = vrot.slane %v682_v19, 1 }
 0x14b   :  { %v626_v30 = vmax.f32 %v624_v15, %v625_v22  ;;  %v632_v31 = vrot.slane %v631_v23, 2  ;;  %v639_v33 = vrot.slane %v638_v25, 2  ;;  %v689_v38 = vmax.f32 %v687_v5, %v688_v14 }
 0x14c   :  { %v620_v37 = vrot.slane %v619_v27, 1  ;;  %v694_v42 = vmax.f32 %v692_v63, %v693_v12  ;;  %v729_v44 = vsel %vm715_vm7, %v1206_v39, %v1204_v34  ;;  %v720_v49 = vsel %vm719_vm9, %v614_v24, %v718_v28 }
 0x14d   :  { %v627_v45 = vrot.slane %v626_v30, 1  ;;  %v633_v47 = vmax.f32 %v631_v23, %v632_v31  ;;  %v640_v48 = vmax.f32 %v638_v25, %v639_v33  ;;  %v690_v51 = vrot.slane %v689_v38, 1 }
 0x14e   :  { %v621_v50 = vmax.f32 %v619_v27, %v620_v37  ;;  %v695_v32 = vrot.slane %v694_v42, 2  ;;  %v730_v43 = vsel %vm717_vm8, %v1208_v40, %v729_v44  ;;  %v684_v58 = vmax.f32 %v682_v19, %v683_v35 }
 0x14f   :  { %v628_v54 = vmax.f32 %v626_v30, %v627_v45  ;;  %v634_v55 = vrot.slane %v633_v47, 1  ;;  %v641_v56 = vrot.slane %v640_v48, 1  ;;  %v731_v46 = vsel %vm719_vm9, %v1238_v29, %v730_v43 }
 0x150   :  { %v722_v57 = vsel %vm721_vm10, %v621_v50, %v720_v49  ;;  %v696_v59 = vmax.f32 %v694_v42, %v695_v32  ;;  %v732_v60 = vsel %vm721_vm10, %v1233_v26, %v731_v46  ;;  %v691_v3 = vmax.f32 %v689_v38, %v690_v51 }
 0x151   :  { %v635_v61 = vmax.f32 %v633_v47, %v634_v55  ;;  %v724_v62 = vsel %vm723_vm11, %v628_v54, %v722_v57  ;;  %v642_v63 = vmax.f32 %v640_v48, %v641_v56  ;;  %v733_v1 = vsel %vm723_vm11, %v684_v58, %v732_v60 }
 0x152   :  { %v697_v0 = vrot.slane %v696_v59, 1  ;;  %v734_v5 = vsel %vm725_vm12, %v691_v3, %v733_v1 }
 0x153   :  { %v726_v2 = vsel %vm725_vm12, %v635_v61, %v724_v62 }
 0x154   :  { %v728_v4 = vsel %vm727_vm13, %v642_v63, %v726_v2  ;;  %v698_v6 = vmax.f32 %v696_v59, %v697_v0 }
 0x155   :  { %738 = vrot.lane.b32.xlu0 %v728_v4, %s1072_s2 }
 0x156   :  { %v735_v7 = vsel %vm727_vm13, %v698_v6, %v734_v5 }
 0x159   :  { %740 = vrot.lane.b32.xlu0 %v735_v7, %s1072_s2 }
 0x1c7   :  { %v739_v36 = vpop.permute.xlu0 %738 }
 0x1c8   :  { %v744_v8 = vrot.slane %v739_v36, 1  ;;  %v745_v9 = vrot.slane %v739_v36, 2  ;;  %v746_v10 = vrot.slane %v739_v36, 3  ;;  %v747_v11 = vrot.slane %v739_v36, 4 }
 0x1c9   :  { %v748_v12 = vrot.slane %v739_v36, 5  ;;  %v749_v13 = vrot.slane %v739_v36, 6  ;;  %v774_v16 = vmax.f32 %v1210_v41, %v739_v36  ;;  %v750_v19 = vrot.slane %v739_v36, 7 }
 0x1ca   :  { %v775_v14 = vmax.f32 %v1218_v52, %v744_v8  ;;  %v776_v15 = vmax.f32 %v1223_v53, %v745_v9  ;;  %v777_v17 = vmax.f32 %v614_v24, %v746_v10  ;;  %v778_v20 = vmax.f32 %v621_v50, %v747_v11 }
 0x1cb   :  { %v741_v18 = vpop.permute.xlu0 %740  ;;  %v779_v23 = vmax.f32 %v628_v54, %v748_v12  ;;  %v780_v25 = vmax.f32 %v635_v61, %v749_v13  ;;  %v781_v38 = vmax.f32 %v642_v63, %v750_v19 }
 0x1cc   :  { %v806_v21 = vrot.slane %v775_v14, 7  ;;  %v751_v22 = vrot.slane %v741_v18, 1  ;;  %v752_v27 = vrot.slane %v741_v18, 2  ;;  %v753_v28 = vrot.slane %v741_v18, 3 }
 0x1cd   :  { %v754_v30 = vrot.slane %v741_v18, 4  ;;  %v755_v31 = vrot.slane %v741_v18, 5  ;;  %v808_v33 = vrot.slane %v776_v15, 6  ;;  %v756_v35 = vrot.slane %v741_v18, 6 }
 0x1ce   :  { %v757_v37 = vrot.slane %v741_v18, 7  ;;  %v783_v52 = vmax.f32 %v1206_v39, %v751_v22  ;;  %v784_v53 = vmax.f32 %v1208_v40, %v752_v27  ;;  %v785_v41 = vmax.f32 %v1238_v29, %v753_v28 }
 0x1cf   :  { %v786_v24 = vmax.f32 %v1233_v26, %v754_v30  ;;  %v782_v42 = vmax.f32 %v1204_v34, %v741_v18  ;;  %v787_v44 = vmax.f32 %v684_v58, %v755_v31  ;;  %v807_v47 = vsel %vm715_vm7, %v806_v21, %v774_v16 }
 0x1d0   :  { %v820_v45 = vrot.slane %v783_v52, 7  ;;  %v810_v48 = vrot.slane %v777_v17, 5  ;;  %v822_v49 = vrot.slane %v784_v53, 6  ;;  %v788_v50 = vmax.f32 %v691_v3, %v756_v35 }
 0x1d1   :  { %v789_v51 = vmax.f32 %v698_v6, %v757_v37  ;;  %v824_v39 = vrot.slane %v785_v41, 5  ;;  %v809_v40 = vsel %vm717_vm8, %v808_v33, %v807_v47  ;;  %v812_v43 = vrot.slane %v778_v20, 4 }
 0x1d2   :  { %v821_v32 = vsel %vm715_vm7, %v820_v45, %v782_v42  ;;  %v826_v29 = vrot.slane %v786_v24, 4  ;;  %v811_v26 = vsel %vm719_vm9, %v810_v48, %v809_v40  ;;  %v814_v54 = vrot.slane %v779_v23, 3 }
 0x1d3   :  { %v823_v34 = vsel %vm717_vm8, %v822_v49, %v821_v32  ;;  %v828_v55 = vrot.slane %v787_v44, 3  ;;  %v813_v56 = vsel %vm721_vm10, %v812_v43, %v811_v26  ;;  %v816_v46 = vrot.slane %v780_v25, 2 }
 0x1d4   :  { %v825_v57 = vsel %vm719_vm9, %v824_v39, %v823_v34  ;;  %v815_v58 = vsel %vm723_vm11, %v814_v54, %v813_v56  ;;  %v818_v59 = vrot.slane %v781_v38, 1  ;;  %v830_v61 = vrot.slane %v788_v50, 2 }
 0x1d5   :  { %v827_v60 = vsel %vm721_vm10, %v826_v29, %v825_v57  ;;  %v817_v62 = vsel %vm725_vm12, %v816_v46, %v815_v58  ;;  %v832_v0 = vrot.slane %v789_v51, 1 }
 0x1d6   :  { %v829_v63 = vsel %vm723_vm11, %v828_v55, %v827_v60  ;;  %v819_v1 = vsel %vm727_vm13, %v818_v59, %v817_v62 }
 0x1d7   :  { %v831_v2 = vsel %vm725_vm12, %v830_v61, %v829_v63  ;;  %836 = vst [vmem:[#allocation5] sm:$0xff] %v819_v1 }
 0x1d8   :  { %v833_v3 = vsel %vm727_vm13, %v832_v0, %v831_v2 }
 0x1d9   :  { %837 = vst [vmem:[#allocation5 + $0x8] sm:$0xff] %v833_v3 }
 0x1da   :  { %1053 = shalt.err (!%p1050_p12)
}
 0x1db   :  { %s1054_s20 = scalar_lea.hbm %s1294_s3, 256 }
 0x1dc   :  { %p1055_p13 = scmp.ne.s32.totalorder %s1294_s3, %s1054_s20  ;;  %p1058_p0 = scmp.lt.u32.totalorder %s1054_s20, %s1294_s3 }
 0x1de   :  { %p1060_p1 = pnand %p1058_p0, %p1055_p13 }
 0x1e0   :  { %1063 = shalt.err (!%p1060_p1)
}
 0x1e1   :  { %s1074_s25 = smov 128   ;;  %s1075_s26 = smov 8  }
 0x1e2   :  { %849 = dma.vmem_to_hbm [thread:$0]  %s844_s16, 256, %s1294_s3, [#allocation4], %s1074_s25, %s1074_s25, %s1075_s26  }
 0x1e3   :  { %1066 = dma.done.wait [#allocation4], 256  }
 0x1e4   :  { %1067 = vsyncadd [#allocation4], 4294967040 }
 0x1e5   :  { %853 = vsyncpa [#allocation3], 1 }
 0x1e6   :  { %854 = vsyncpa [#allocation4], 1 }

</bundles_post_ra>
